<compile_context>
chip_gen: v6e
topology: v6e:2x2x1
jax: 0.10.0
libtpu: 0.0.40
codegen_flags: <defaults>
</compile_context>

<pallas_src>
import jax
import jax.numpy as jnp
from jax.experimental import pallas as pl
from jax.experimental.pallas import tpu as pltpu


# --------------------------------------------------------------------------- #
# In-kernel math helpers
# --------------------------------------------------------------------------- #
def _erf(x):
    # Abramowitz & Stegun 7.1.26 polynomial erf (max abs err ~1.5e-7) using only
    # exp/mul/add/where so it is guaranteed to lower in Mosaic.
    a1, a2, a3, a4, a5 = 0.254829592, -0.284496736, 1.421413741, -1.453152027, 1.061405429
    p = 0.3275911
    ax = jnp.abs(x)
    t = 1.0 / (1.0 + p * ax)
    poly = ((((a5 * t + a4) * t + a3) * t + a2) * t + a1) * t
    y = 1.0 - poly * jnp.exp(-ax * ax)
    return jnp.where(x >= 0.0, y, -y)


def _gelu_exact(x):
    # F.gelu default (erf-based, not tanh approximation)
    return 0.5 * x * (1.0 + _erf(x * 0.7071067811865476))


def _largest_divisor_leq(n, cap):
    for c in range(min(n, cap), 0, -1):
        if n % c == 0:
            return c
    return 1


def _pick_row_block(rows, cap=512):
    if rows <= cap:
        return rows
    for rb in range(cap - cap % 8, 7, -8):     # multiples of 8 (sublane constraint)
        if rows % rb == 0:
            return rb
    return rows                                # fallback: single block


# --------------------------------------------------------------------------- #
# Phase 1 kernel: LayerNorm -> GELU -> fused input projection (both directions)
# --------------------------------------------------------------------------- #
def _make_proj_kernel():
    def proj_kernel(x_ref, lng_ref, lnb_ref, wih_ref, bih_ref, gi_ref):
        x = x_ref[...]                                           # (Rb, D)
        mean = jnp.mean(x, axis=-1, keepdims=True)
        xc = x - mean
        var = jnp.mean(xc * xc, axis=-1, keepdims=True)
        xn = xc * jax.lax.rsqrt(var + 1e-5)
        xn = xn * lng_ref[...] + lnb_ref[...]
        xg = _gelu_exact(xn)                                     # (Rb, D)
        # One big batched matmul per direction (all 3 gates fused along 3H).
        gi_ref[0] = jnp.dot(xg, wih_ref[0],
                            preferred_element_type=jnp.float32) + bih_ref[0]
        gi_ref[1] = jnp.dot(xg, wih_ref[1],
                            preferred_element_type=jnp.float32) + bih_ref[1]
    return proj_kernel


# --------------------------------------------------------------------------- #
# Phase 2 kernel: sequential GRU recurrence, Tt timesteps per grid step
# --------------------------------------------------------------------------- #
def _make_recurrence_kernel(Tt, H):
    def rec_kernel(gi_ref, whh_ref, bhh_ref, out_ref, h_ref):
        d = pl.program_id(0)                 # direction: 0 = forward, 1 = backward

        @pl.when(pl.program_id(1) == 0)
        def _():
            h_ref[...] = jnp.zeros_like(h_ref)

        # Direction-selected recurrent weights, loaded once per grid step
        # (whole-array VMEM operands: no double-buffering, no re-DMA).
        whh = whh_ref[d]                                         # (H, 3H)
        bhh = bhh_ref[d]                                         # (1, 3H)

        def step(j, h):
            # forward: idx = j ; backward: idx = Tt-1-j (in-block time reversal)
            idx = j + d * (Tt - 1 - 2 * j)
            gi = gi_ref[idx]                                     # (B, 3H)
            gh = jnp.dot(h, whh, preferred_element_type=jnp.float32) + bhh
            r = jax.nn.sigmoid(gi[:, 0:H] + gh[:, 0:H])
            z = jax.nn.sigmoid(gi[:, H:2 * H] + gh[:, H:2 * H])
            n = jnp.tanh(gi[:, 2 * H:3 * H] + r * gh[:, 2 * H:3 * H])
            h_new = (1.0 - z) * n + z * h
            out_ref[idx] = h_new
            return h_new

        h_final = jax.lax.fori_loop(0, Tt, step, h_ref[...], unroll=True)
        h_ref[...] = h_final
    return rec_kernel


# --------------------------------------------------------------------------- #
# Wrapper
# --------------------------------------------------------------------------- #
def bidirectional_gru_forward(x, params):
    """x: (B, T, D) float32  ->  (B, T, 2*H) float32 (eval mode; dropout = identity)."""
    B, T, D = x.shape
    H = params["w_hh"].shape[1] // 3
    H3 = 3 * H

    x_rows = jnp.transpose(x, (1, 0, 2)).astype(jnp.float32).reshape(T * B, D)

    ln_g = params["ln_gamma"].reshape(1, D).astype(jnp.float32)
    ln_b = params["ln_beta"].reshape(1, D).astype(jnp.float32)

    # PyTorch GRU layout: weight_ih (3H, D), gate order [r, z, n].
    # Pre-transpose for x @ W form, keeping the 3 gates fused along the 3H axis.
    w_ih = jnp.transpose(params["w_ih"].astype(jnp.float32), (0, 2, 1))    # (2, D, 3H)
    w_hh = jnp.transpose(params["w_hh"].astype(jnp.float32), (0, 2, 1))    # (2, H, 3H)
    b_ih = params["b_ih"].astype(jnp.float32).reshape(2, 1, H3)
    b_hh = params["b_hh"].astype(jnp.float32).reshape(2, 1, H3)
    # NOTE: on v5e/v6e the matmul operands (xg, h, W) could be cast to bfloat16
    # (f32 accumulation) for the bf16 MXU path; kept f32 here for exact parity
    # with the PyTorch float32 module.

    def vmem():
        # Whole-array, single-buffered VMEM operand (no pipelining buffers).
        return pl.BlockSpec(memory_space=pltpu.MemorySpace.VMEM)

    # ---------------- Phase 1: time-parallel input projection -------------------- #
    rows = T * B
    Rb = _pick_row_block(rows)
    n_rb = rows // Rb

    gi = pl.pallas_call(
        _make_proj_kernel(),
        out_shape=jax.ShapeDtypeStruct((2, rows, H3), jnp.float32),
        grid_spec=pltpu.PrefetchScalarGridSpec(
            num_scalar_prefetch=0,
            grid=(n_rb,),
            in_specs=[
                pl.BlockSpec((Rb, D), lambda r: (r, 0)),         # x rows
                vmem(),                                          # ln gamma (1, D)
                vmem(),                                          # ln beta  (1, D)
                vmem(),                                          # W_ih (2, D, 3H)
                vmem(),                                          # b_ih (2, 1, 3H)
            ],
            out_specs=pl.BlockSpec((2, Rb, H3), lambda r: (0, r, 0)),
        ),
        compiler_params=pltpu.CompilerParams(dimension_semantics=("parallel",)),
    )(x_rows, ln_g, ln_b, w_ih, b_ih)

    gi4 = gi.reshape(2, T, B, H3)            # contiguous -> free reshape

    # ---------------- Phase 2: sequential bidirectional recurrence --------------- #
    Tt = _largest_divisor_leq(T, 16)         # timesteps per grid step (amortize ~0.35us/step)
    n_tb = T // Tt

    def t_block(d, tb):
        # forward: tb ; backward: n_tb - 1 - tb (time-block reversal via index_map)
        return tb + d * (n_tb - 1 - 2 * tb)

    out = pl.pallas_call(
        _make_recurrence_kernel(Tt, H),
        out_shape=jax.ShapeDtypeStruct((2, T, B, H), jnp.float32),
        grid_spec=pltpu.PrefetchScalarGridSpec(
            num_scalar_prefetch=0,
            grid=(2, n_tb),
            in_specs=[
                pl.BlockSpec((None, Tt, B, H3),
                             lambda d, tb: (d, t_block(d, tb), 0, 0)),   # gi slab
                vmem(),                                                  # W_hh (2, H, 3H)
                vmem(),                                                  # b_hh (2, 1, 3H)
            ],
            out_specs=pl.BlockSpec((None, Tt, B, H),
                                   lambda d, tb: (d, t_block(d, tb), 0, 0)),
            scratch_shapes=[pltpu.VMEM((B, H), jnp.float32)],            # hidden state
        ),
        compiler_params=pltpu.CompilerParams(
            dimension_semantics=("parallel", "arbitrary")),   # directions -> v7x 2 TCs
    )(gi4, w_hh, b_hh)

    # (2, T, B, H) -> (B, T, 2, H) -> (B, T, 2H)   (single transpose + free reshape)
    y = jnp.transpose(out, (2, 1, 0, 3)).reshape(B, T, 2 * H)
    # nn.Dropout is identity at inference time.
    # TODO(synk): training-mode dropout (stochastic masking) not implemented.
    return y


# --------------------------------------------------------------------------- #
# Deterministic parameter init (shapes from BidirectionalGRU.__init__)
# --------------------------------------------------------------------------- #
def init_params(key, rnn_dim, hidden):
    k = 1.0 / (hidden ** 0.5)   # PyTorch GRU default: U(-1/sqrt(H), 1/sqrt(H))
    ks = jax.random.split(key, 4)
    return {
        "ln_gamma": jnp.ones((rnn_dim,), jnp.float32),
        "ln_beta": jnp.zeros((rnn_dim,), jnp.float32),
        # leading dim 2 = [forward, backward] direction
        "w_ih": jax.random.uniform(ks[0], (2, 3 * hidden, rnn_dim), jnp.float32, -k, k),
        "w_hh": jax.random.uniform(ks[1], (2, 3 * hidden, hidden), jnp.float32, -k, k),
        "b_ih": jax.random.uniform(ks[2], (2, 3 * hidden), jnp.float32, -k, k),
        "b_hh": jax.random.uniform(ks[3], (2, 3 * hidden), jnp.float32, -k, k),
    }


# --------------------------------------------------------------------------- #
# Pure-JAX reference (mirrors the PyTorch forward) for a sanity check
# --------------------------------------------------------------------------- #
def reference_forward(x, params):
    B, T, D = x.shape
    H = params["w_hh"].shape[1] // 3
    mean = jnp.mean(x, -1, keepdims=True)
    var = jnp.mean((x - mean) ** 2, -1, keepdims=True)
    xn = (x - mean) / jnp.sqrt(var + 1e-5) * params["ln_gamma"] + params["ln_beta"]
    xg = 0.5 * xn * (1.0 + jax.lax.erf(xn / jnp.sqrt(2.0)))
    outs = []
    for d in range(2):
        w_ih, w_hh = params["w_ih"][d], params["w_hh"][d]
        b_ih, b_hh = params["b_ih"][d], params["b_hh"][d]
        seq = xg if d == 0 else xg[:, ::-1]
        h = jnp.zeros((B, H), jnp.float32)
        hs = []
        for t in range(T):
            xt = seq[:, t]
            gi = xt @ w_ih.T + b_ih
            gh = h @ w_hh.T + b_hh
            r = jax.nn.sigmoid(gi[:, :H] + gh[:, :H])
            z = jax.nn.sigmoid(gi[:, H:2 * H] + gh[:, H:2 * H])
            n = jnp.tanh(gi[:, 2 * H:] + r * gh[:, 2 * H:])
            h = (1.0 - z) * n + z * h
            hs.append(h)
        hs = jnp.stack(hs, axis=1)
        if d == 1:
            hs = hs[:, ::-1]
        outs.append(hs)
    return jnp.concatenate(outs, axis=-1)


if __name__ == "__main__":
    B, T, rnn_dim, hidden = 2, 8, 32, 32   # small shapes; 2*hidden output features
    key = jax.random.PRNGKey(0)
    kx, kp = jax.random.split(key)
    x = jax.random.normal(kx, (B, T, rnn_dim), jnp.float32)
    params = init_params(kp, rnn_dim, hidden)

    y = bidirectional_gru_forward(x, params)
    y = jax.block_until_ready(y)

    assert y.shape == (B, T, 2 * hidden), y.shape
    y_ref = reference_forward(x, params)
    if not jnp.allclose(y, y_ref, atol=1e-3, rtol=1e-3):
        raise AssertionError("Pallas BiGRU output mismatch vs JAX reference")

    print("KERNEL_OK")
</pallas_src>

<mosaic_0001>
module attributes {stable_mosaic.version = 11 : i64} {
  func.func @proj_kernel(%arg0: i32, %arg1: memref<16x32xf32, #tpu.memory_space<vmem>>, %arg2: memref<1x32xf32, #tpu.memory_space<vmem>>, %arg3: memref<1x32xf32, #tpu.memory_space<vmem>>, %arg4: memref<2x32x96xf32, #tpu.memory_space<vmem>>, %arg5: memref<2x1x96xf32, #tpu.memory_space<vmem>>, %arg6: memref<2x16x96xf32, #tpu.memory_space<vmem>>) attributes {dimension_semantics = [#tpu.dimension_semantics<parallel>], iteration_bounds = array<i64: 1>, scalar_prefetch = 0 : i64, scratch_operands = 0 : i64, tpu.core_type = #tpu.core_type<tc>, window_params = [{transform_indices = @transform_0, window_bounds = array<i64: 16, 32>}, {pipeline_mode = #tpu.pipeline_mode<synchronous>, transform_indices = @transform_1, window_bounds = array<i64: 1, 32>}, {pipeline_mode = #tpu.pipeline_mode<synchronous>, transform_indices = @transform_2, window_bounds = array<i64: 1, 32>}, {pipeline_mode = #tpu.pipeline_mode<synchronous>, transform_indices = @transform_3, window_bounds = array<i64: 2, 32, 96>}, {pipeline_mode = #tpu.pipeline_mode<synchronous>, transform_indices = @transform_4, window_bounds = array<i64: 2, 1, 96>}, {transform_indices = @transform_5, window_bounds = array<i64: 2, 16, 96>}]} {
    %c0 = arith.constant 0 : index
    %c0_0 = arith.constant 0 : index
    %0 = vector.load %arg1[%c0, %c0_0] : memref<16x32xf32, #tpu.memory_space<vmem>>, vector<16x32xf32>
    %cst = arith.constant dense<0.000000e+00> : vector<16xf32>
    %1 = vector.multi_reduction <add>, %0, %cst [1] : vector<16x32xf32> to vector<16xf32>
    %2 = vector.shape_cast %1 : vector<16xf32> to vector<16x1xf32>
    %cst_1 = arith.constant 3.200000e+01 : f32
    %3 = vector.broadcast %cst_1 : f32 to vector<16x1xf32>
    %4 = arith.divf %2, %3 : vector<16x1xf32>
    %5 = vector.broadcast %4 : vector<16x1xf32> to vector<16x32xf32>
    %6 = arith.subf %0, %5 : vector<16x32xf32>
    %7 = arith.mulf %6, %6 : vector<16x32xf32>
    %cst_2 = arith.constant dense<0.000000e+00> : vector<16xf32>
    %8 = vector.multi_reduction <add>, %7, %cst_2 [1] : vector<16x32xf32> to vector<16xf32>
    %9 = vector.shape_cast %8 : vector<16xf32> to vector<16x1xf32>
    %cst_3 = arith.constant 3.200000e+01 : f32
    %10 = vector.broadcast %cst_3 : f32 to vector<16x1xf32>
    %11 = arith.divf %9, %10 : vector<16x1xf32>
    %cst_4 = arith.constant 9.99999974E-6 : f32
    %12 = vector.broadcast %cst_4 : f32 to vector<16x1xf32>
    %13 = arith.addf %11, %12 : vector<16x1xf32>
    %14 = math.rsqrt %13 : vector<16x1xf32>
    %15 = vector.broadcast %14 : vector<16x1xf32> to vector<16x32xf32>
    %16 = arith.mulf %6, %15 : vector<16x32xf32>
    %c0_5 = arith.constant 0 : index
    %c0_6 = arith.constant 0 : index
    %17 = vector.load %arg2[%c0_5, %c0_6] : memref<1x32xf32, #tpu.memory_space<vmem>>, vector<1x32xf32>
    %18 = vector.broadcast %17 : vector<1x32xf32> to vector<16x32xf32>
    %19 = arith.mulf %16, %18 : vector<16x32xf32>
    %c0_7 = arith.constant 0 : index
    %c0_8 = arith.constant 0 : index
    %20 = vector.load %arg3[%c0_7, %c0_8] : memref<1x32xf32, #tpu.memory_space<vmem>>, vector<1x32xf32>
    %21 = vector.broadcast %20 : vector<1x32xf32> to vector<16x32xf32>
    %22 = arith.addf %19, %21 : vector<16x32xf32>
    %cst_9 = arith.constant 5.000000e-01 : f32
    %23 = vector.broadcast %cst_9 : f32 to vector<16x32xf32>
    %24 = arith.mulf %23, %22 : vector<16x32xf32>
    %cst_10 = arith.constant 0.707106769 : f32
    %25 = vector.broadcast %cst_10 : f32 to vector<16x32xf32>
    %26 = arith.mulf %22, %25 : vector<16x32xf32>
    %27 = math.absf %26 : vector<16x32xf32>
    %cst_11 = arith.constant 0.327591091 : f32
    %28 = vector.broadcast %cst_11 : f32 to vector<16x32xf32>
    %29 = arith.mulf %28, %27 : vector<16x32xf32>
    %cst_12 = arith.constant 1.000000e+00 : f32
    %30 = vector.broadcast %cst_12 : f32 to vector<16x32xf32>
    %31 = arith.addf %30, %29 : vector<16x32xf32>
    %cst_13 = arith.constant 1.000000e+00 : f32
    %32 = vector.broadcast %cst_13 : f32 to vector<16x32xf32>
    %33 = arith.divf %32, %31 : vector<16x32xf32>
    %cst_14 = arith.constant 1.06140542 : f32
    %34 = vector.broadcast %cst_14 : f32 to vector<16x32xf32>
    %35 = arith.mulf %34, %33 : vector<16x32xf32>
    %cst_15 = arith.constant -1.45315206 : f32
    %36 = vector.broadcast %cst_15 : f32 to vector<16x32xf32>
    %37 = arith.addf %35, %36 : vector<16x32xf32>
    %38 = arith.mulf %37, %33 : vector<16x32xf32>
    %cst_16 = arith.constant 1.42141378 : f32
    %39 = vector.broadcast %cst_16 : f32 to vector<16x32xf32>
    %40 = arith.addf %38, %39 : vector<16x32xf32>
    %41 = arith.mulf %40, %33 : vector<16x32xf32>
    %cst_17 = arith.constant -0.284496725 : f32
    %42 = vector.broadcast %cst_17 : f32 to vector<16x32xf32>
    %43 = arith.addf %41, %42 : vector<16x32xf32>
    %44 = arith.mulf %43, %33 : vector<16x32xf32>
    %cst_18 = arith.constant 0.254829586 : f32
    %45 = vector.broadcast %cst_18 : f32 to vector<16x32xf32>
    %46 = arith.addf %44, %45 : vector<16x32xf32>
    %47 = arith.mulf %46, %33 : vector<16x32xf32>
    %cst_19 = arith.constant 0.000000e+00 : f32
    %48 = vector.broadcast %cst_19 : f32 to vector<16x32xf32>
    %49 = arith.subf %48, %27 : vector<16x32xf32>
    %50 = arith.mulf %49, %27 : vector<16x32xf32>
    %51 = math.exp %50 : vector<16x32xf32>
    %52 = arith.mulf %47, %51 : vector<16x32xf32>
    %cst_20 = arith.constant 1.000000e+00 : f32
    %53 = vector.broadcast %cst_20 : f32 to vector<16x32xf32>
    %54 = arith.subf %53, %52 : vector<16x32xf32>
    %cst_21 = arith.constant 0.000000e+00 : f32
    %55 = vector.broadcast %cst_21 : f32 to vector<16x32xf32>
    %56 = arith.cmpf oge, %26, %55 : vector<16x32xf32>
    %cst_22 = arith.constant 0.000000e+00 : f32
    %57 = vector.broadcast %cst_22 : f32 to vector<16x32xf32>
    %58 = arith.subf %57, %54 : vector<16x32xf32>
    %59 = arith.select %56, %54, %58 : vector<16x32xi1>, vector<16x32xf32>
    %cst_23 = arith.constant 1.000000e+00 : f32
    %60 = vector.broadcast %cst_23 : f32 to vector<16x32xf32>
    %61 = arith.addf %60, %59 : vector<16x32xf32>
    %62 = arith.mulf %24, %61 : vector<16x32xf32>
    %c0_24 = arith.constant 0 : index
    %c0_25 = arith.constant 0 : index
    %c0_26 = arith.constant 0 : index
    %63 = vector.load %arg4[%c0_24, %c0_25, %c0_26] : memref<2x32x96xf32, #tpu.memory_space<vmem>>, vector<1x32x96xf32>
    %64 = vector.shape_cast %63 : vector<1x32x96xf32> to vector<32x96xf32>
    %cst_27 = arith.constant dense<0.000000e+00> : vector<16x96xf32>
    %65 = tpu.matmul %62, %64, %cst_27 {dimension_numbers = #tpu.dot_dimension_numbers<[1], [0], [0], [1], [0, 0, 1, 1], [], []>} : vector<16x32xf32>, vector<32x96xf32>, vector<16x96xf32> -> vector<16x96xf32>
    %c0_28 = arith.constant 0 : index
    %c0_29 = arith.constant 0 : index
    %c0_30 = arith.constant 0 : index
    %66 = vector.load %arg5[%c0_28, %c0_29, %c0_30] : memref<2x1x96xf32, #tpu.memory_space<vmem>>, vector<1x1x96xf32>
    %67 = vector.shape_cast %66 : vector<1x1x96xf32> to vector<1x96xf32>
    %68 = vector.broadcast %67 : vector<1x96xf32> to vector<16x96xf32>
    %69 = arith.addf %65, %68 : vector<16x96xf32>
    %c0_31 = arith.constant 0 : index
    %c0_32 = arith.constant 0 : index
    %c0_33 = arith.constant 0 : index
    %70 = vector.load %arg6[%c0_31, %c0_32, %c0_33] : memref<2x16x96xf32, #tpu.memory_space<vmem>>, vector<1x16x96xf32>
    %71 = vector.shape_cast %70 : vector<1x16x96xf32> to vector<16x96xf32>
    %72 = vector.shape_cast %69 : vector<16x96xf32> to vector<1x16x96xf32>
    tpu.vector_store %arg6[%c0_31, %c0_32, %c0_33], %72 {strides = array<i32>} : memref<2x16x96xf32, #tpu.memory_space<vmem>>, vector<1x16x96xf32>,
    %c1 = arith.constant 1 : index
    %c0_34 = arith.constant 0 : index
    %c0_35 = arith.constant 0 : index
    %73 = vector.load %arg4[%c1, %c0_34, %c0_35] : memref<2x32x96xf32, #tpu.memory_space<vmem>>, vector<1x32x96xf32>
    %74 = vector.shape_cast %73 : vector<1x32x96xf32> to vector<32x96xf32>
    %cst_36 = arith.constant dense<0.000000e+00> : vector<16x96xf32>
    %75 = tpu.matmul %62, %74, %cst_36 {dimension_numbers = #tpu.dot_dimension_numbers<[1], [0], [0], [1], [0, 0, 1, 1], [], []>} : vector<16x32xf32>, vector<32x96xf32>, vector<16x96xf32> -> vector<16x96xf32>
    %c1_37 = arith.constant 1 : index
    %c0_38 = arith.constant 0 : index
    %c0_39 = arith.constant 0 : index
    %76 = vector.load %arg5[%c1_37, %c0_38, %c0_39] : memref<2x1x96xf32, #tpu.memory_space<vmem>>, vector<1x1x96xf32>
    %77 = vector.shape_cast %76 : vector<1x1x96xf32> to vector<1x96xf32>
    %78 = vector.broadcast %77 : vector<1x96xf32> to vector<16x96xf32>
    %79 = arith.addf %75, %78 : vector<16x96xf32>
    %c1_40 = arith.constant 1 : index
    %c0_41 = arith.constant 0 : index
    %c0_42 = arith.constant 0 : index
    %80 = vector.load %arg6[%c1_40, %c0_41, %c0_42] : memref<2x16x96xf32, #tpu.memory_space<vmem>>, vector<1x16x96xf32>
    %81 = vector.shape_cast %80 : vector<1x16x96xf32> to vector<16x96xf32>
    %82 = vector.shape_cast %79 : vector<16x96xf32> to vector<1x16x96xf32>
    tpu.vector_store %arg6[%c1_40, %c0_41, %c0_42], %82 {strides = array<i32>} : memref<2x16x96xf32, #tpu.memory_space<vmem>>, vector<1x16x96xf32>,
    return
  }
  func.func @transform_0(%arg0: i32) -> (i32, i32) {
    %c0_i32 = arith.constant 0 : i32
    %c0_i32_0 = arith.constant 0 : i32
    return %arg0, %c0_i32 : i32, i32
  }
  func.func @transform_1(%arg0: i32) -> (i32, i32) {
    %c0_i32 = arith.constant 0 : i32
    %c0_i32_0 = arith.constant 0 : i32
    %c0_i32_1 = arith.constant 0 : i32
    return %c0_i32, %c0_i32_0 : i32, i32
  }
  func.func @transform_2(%arg0: i32) -> (i32, i32) {
    %c0_i32 = arith.constant 0 : i32
    %c0_i32_0 = arith.constant 0 : i32
    %c0_i32_1 = arith.constant 0 : i32
    return %c0_i32, %c0_i32_0 : i32, i32
  }
  func.func @transform_3(%arg0: i32) -> (i32, i32, i32) {
    %c0_i32 = arith.constant 0 : i32
    %c0_i32_0 = arith.constant 0 : i32
    %c0_i32_1 = arith.constant 0 : i32
    %c0_i32_2 = arith.constant 0 : i32
    return %c0_i32, %c0_i32_0, %c0_i32_1 : i32, i32, i32
  }
  func.func @transform_4(%arg0: i32) -> (i32, i32, i32) {
    %c0_i32 = arith.constant 0 : i32
    %c0_i32_0 = arith.constant 0 : i32
    %c0_i32_1 = arith.constant 0 : i32
    %c0_i32_2 = arith.constant 0 : i32
    return %c0_i32, %c0_i32_0, %c0_i32_1 : i32, i32, i32
  }
  func.func @transform_5(%arg0: i32) -> (i32, i32, i32) {
    %c0_i32 = arith.constant 0 : i32
    %c0_i32_0 = arith.constant 0 : i32
    %c0_i32_1 = arith.constant 0 : i32
    return %c0_i32, %arg0, %c0_i32_0 : i32, i32, i32
  }
}

</mosaic_0001>

<bundles_post_ra>
// kernel: tpu_custom_call.1
= control target key start
LH: loop header
LB: loop body
LE: loop exit
PB: predicated region body
PF: predicated region fallthrough
CT: control target
= control target key end

     0   :  { %10 = vsyncpa [#allocation3], 0  ;;  %s587_s0 = inlined_call_operand.hbm [shape: f32[16,32], index: 0, kind: input, shape index: {}]   ;;  %s588_s1 = inlined_call_operand.vmem [shape: f32[1,32], index: 1, kind: input, shape index: {}]   ;;  %s589_s2 = inlined_call_operand.hbm [shape: f32[1,32], index: 2, kind: input, shape index: {}]   ;;  %s590_s3 = inlined_call_operand.hbm [shape: f32[2,32,96], index: 3, kind: input, shape index: {}]   ;;  %s591_s4 = inlined_call_operand.vmem [shape: f32[2,1,96], index: 4, kind: input, shape index: {}]   ;;  %s592_s5 = inlined_call_operand.hbm [shape: f32[2,16,96], index: 5, kind: output, shape index: {}]  }
   0x1   :  { %11 = vsyncpa [#allocation6], 0 }
   0x2   :  { %12 = vsyncpa [#allocation4], 0  ;;  %s513_s18 = smov [#allocation5]   ;;  %s514_s20 = smov [#allocation2]  }
   0x3   :  { %s33_s19 = sshll.u32 %s513_s18, 4  ;;  %s18_s21 = sshll.u32 %s514_s20, 4  ;;  %s34_s19 = int_to_ptr.vmem [resolvable:$true] %s33_s19  ;;  %s19_s21 = int_to_ptr.vmem [resolvable:$true] %s18_s21 }
   0x4   :  { %s435_s22 = scalar_lea.vmem %s34_s19, 16  ;;  %s439_s23 = scalar_lea.vmem %s34_s19, 32 }
   0x5   :  { %p436_p0 = scmp.ne.s32.totalorder %s34_s19, %s435_s22  ;;  %p440_p1 = scmp.lt.s32.totalorder %s34_s19, %s34_s19 }
   0x6   :  { %p441_p2 = scmp.lt.s32.totalorder %s439_s23, %s435_s22 }
   0x8   :  { %p442_p3 = por %p441_p2, %p440_p1 }
   0xa   :  { %p443_p4 = pnand %p442_p3, %p436_p0 }
   0xc   :  { %446 = shalt.err (!%p443_p4)
}
   0xd   :  { %36 = dma.hbm_to_vmem [thread:$0]  %s589_s2, 16, %s34_s19, [#allocation6]  }
   0xe   :  { %s455_s26 = scalar_lea.vmem %s19_s21, 256  ;;  %p460_p6 = scmp.lt.s32.totalorder %s19_s21, %s19_s21 }
   0xf   :  { %p456_p5 = scmp.ne.s32.totalorder %s19_s21, %s455_s26  ;;  %p461_p7 = scmp.lt.s32.totalorder %s455_s26, %s455_s26 }
  0x11   :  { %p462_p8 = por %p461_p7, %p460_p6 }
  0x13   :  { %p463_p9 = pnand %p462_p8, %p456_p5 }
  0x15   :  { %466 = shalt.err (!%p463_p9)
}
  0x16   :  { %s515_s27 = smov 128   ;;  %s516_s28 = smov 8  }
  0x17   :  { %24 = dma.hbm_to_vmem [thread:$0]  %s587_s0, 256, %s19_s21, [#allocation3], %s515_s27, %s515_s27, %s516_s28  }
  0x18   :  { %s517_s6 = smov [#allocation7]  }
  0x19   :  { %s42_s7 = sshll.u32 %s517_s6, 4  ;;  %s43_s7 = int_to_ptr.vmem [resolvable:$true] %s42_s7 }
  0x1a   :  { %s475_s2 = scalar_lea.vmem %s43_s7, 1024  ;;  %p480_p11 = scmp.lt.s32.totalorder %s43_s7, %s43_s7 }
  0x1b   :  { %p476_p10 = scmp.ne.s32.totalorder %s43_s7, %s475_s2  ;;  %p481_p12 = scmp.lt.s32.totalorder %s475_s2, %s475_s2 }
  0x1d   :  { %p482_p13 = por %p481_p12, %p480_p11 }
  0x1f   :  { %p483_p0 = pnand %p482_p13, %p476_p10 }
  0x21   :  { %486 = shalt.err (!%p483_p0)
}
  0x22   :  { %48 = dma.hbm_to_vmem [thread:$0]  %s590_s3, 1024, %s43_s7, [#allocation6], %s515_s27, %s515_s27, %s516_s28  }
  0x23   :  { %507 = dma.done.wait [#allocation3], 256  }
  0x24   :  { %508 = vsyncadd [#allocation3], 4294967040 }
  0x25   :  { %509 = dma.done.wait [#allocation6], 1040  }
  0x26   :  { %510 = vsyncadd [#allocation6], 4294966256  ;;  %vm62_vm0 = vcmask 261120   ;;  %v60_v0 = vld [vmem:[#allocation2] sm:$0xff]  ;;  %v61_v1 = vld [vmem:[#allocation2 + $0x8] sm:$0xff]  ;;  %vm254_vm3 = vcmask 785408  }
  0x27   :  { %v63_v2 = vsel %vm62_vm0, %v60_v0, 0.0  ;;  %v66_v3 = vsel %vm62_vm0, %v61_v1, 0.0  ;;  %v165_v14 = vld [vmem:[#allocation7 + $0x18] sm:$0xff]  ;;  %v164_v16 = vld [vmem:[#allocation7 + $0x10] sm:$0xff]  ;;  %v163_v18 = vld [vmem:[#allocation7 + $0x8] sm:$0xff]  ;;  %s518_s13 = smov [#allocation8]  }
  0x28   :  { %64 = vadd.xlane.f32.xlu0 %v63_v2  ;;  %v261_v15 = vld [vmem:[#allocation7 + $0x38] sm:$0xff]  ;;  %387 = vmatprep.subr.mxu0 %v165_v14  ;;  %v260_v17 = vld [vmem:[#allocation7 + $0x30] sm:$0xff]  ;;  %v259_v19 = vld [vmem:[#allocation7 + $0x28] sm:$0xff]  ;;  %s353_s14 = sshll.u32 %s518_s13, 4  ;;  %s354_s14 = int_to_ptr.vmem [resolvable:$true] %s353_s14 }
  0x29   :  { %398 = vmatprep.subr.mxu1 %v261_v15  ;;  %388 = vmatpush3.msra.mxu0 %v165_v14  ;;  %v162_v20 = vld [vmem:[#allocation7] sm:$0xff]  ;;  %v366_v29 = vld [vmem:[%s588_s1] ss:$0 sm:$0xff]  ;;  %v367_v31 = vld [vmem:[#allocation5] ss:$0 sm:$0xff]  ;;  %s487_s15 = scalar_lea.vmem %s354_s14, 512  ;;  %p492_p2 = scmp.lt.s32.totalorder %s354_s14, %s354_s14 }
  0x2a   :  { %399 = vmatpush3.msra.mxu1 %v261_v15  ;;  %389 = vmatprep.subr.mxu0 %v164_v16  ;;  %v258_v21 = vld [vmem:[#allocation7 + $0x20] sm:$0xff]  ;;  %p488_p1 = scmp.ne.s32.totalorder %s354_s14, %s487_s15  ;;  %p493_p3 = scmp.lt.s32.totalorder %s487_s15, %s487_s15 }
  0x2b   :  { %400 = vmatprep.subr.mxu1 %v260_v17  ;;  %390 = vmatpush3.msra.mxu0 %v164_v16 }
  0x2c   :  { %67 = vadd.xlane.f32.xlu0 %v66_v3  ;;  %401 = vmatpush3.msra.mxu1 %v260_v17  ;;  %p494_p4 = por %p493_p3, %p492_p2 }
  0x2d   :  { %391 = vmatprep.subr.mxu0 %v163_v18  ;;  %402 = vmatprep.subr.mxu1 %v259_v19 }
  0x2e   :  { %392 = vmatpush3.msra.mxu0 %v163_v18  ;;  %403 = vmatpush3.msra.mxu1 %v259_v19  ;;  %p495_p5 = pnand %p494_p4, %p488_p1 }
  0x2f   :  { %393 = vmatprep.subr.mxu0 %v162_v20  ;;  %404 = vmatprep.subr.mxu1 %v258_v21 }
  0x30   :  { %394 = vmatpush3.msra.mxu0 %v162_v20  ;;  %405 = vmatpush3.msra.mxu1 %v258_v21 }
  0xb1   :  { %v65_v4 = vpop.xlane.xlu0 %64 }
  0xb2   :  { %v70_v5 = vmul.f32 0.03125, %v65_v4 }
  0xb4   :  { %v72_v6 = vsub.f32 %v60_v0, %v70_v5 }
  0xb5   :  { %v68_v7 = vpop.xlane.xlu0 %67 }
  0xb6   :  { %v71_v8 = vmul.f32 0.03125, %v68_v7  ;;  %v74_v9 = vmul.f32 %v72_v6, %v72_v6 }
  0xb8   :  { %v73_v10 = vsub.f32 %v61_v1, %v71_v8  ;;  %v76_v11 = vsel %vm62_vm0, %v74_v9, 0.0 }
  0xb9   :  { %77 = vadd.xlane.f32.xlu1 %v76_v11 }
  0xba   :  { %v75_v12 = vmul.f32 %v73_v10, %v73_v10 }
  0xbc   :  { %v79_v13 = vsel %vm62_vm0, %v75_v12, 0.0 }
  0xbd   :  { %80 = vadd.xlane.f32.xlu1 %v79_v13 }
 0x142   :  { %v78_v22 = vpop.xlane.xlu1 %77 }
 0x143   :  { %v82_v23 = vmul.f32 0.03125, %v78_v22 }
 0x145   :  { %v84_v24 = vadd.f32 1e-05, %v82_v23 }
 0x146   :  { %v81_v25 = vpop.xlane.xlu1 %80 }
 0x147   :  { %415 = vrsqrt.f32 %v84_v24  ;;  %v83_v26 = vmul.f32 0.03125, %v81_v25  ;;  %v368_v24 = vld [vmem:[%s591_s4] ss:$0 sm:$0xff]  ;;  %v372_v25 = vld [vmem:[%s591_s4 + $0x1] ss:$0 sm:$0xff] }
 0x149   :  { %v85_v27 = vadd.f32 1e-05, %v83_v26 }
 0x14b   :  { %417 = vrsqrt.f32 %v85_v27 }
 0x154   :  { %v416_v28 = vpop.eup %415 }
 0x155   :  { %v88_v30 = vmul.f32 %v416_v28, %v72_v6 }
 0x157   :  { %v97_v32 = vmul.f32 %v366_v29, %v88_v30 }
 0x158   :  { %v418_v33 = vpop.eup %417 }
 0x159   :  { %v89_v34 = vmul.f32 %v418_v33, %v73_v10  ;;  %v106_v35 = vadd.f32 %v367_v31, %v97_v32 }
 0x15b   :  { %v98_v36 = vmul.f32 %v366_v29, %v89_v34  ;;  %v110_v37 = vmul.f32 0.70710677, %v106_v35  ;;  %v108_v16 = vmul.f32 0.5, %v106_v35 }
 0x15d   :  { %v107_v38 = vadd.f32 %v367_v31, %v98_v36  ;;  %v112_v39 = vand.u32 2147483647, %v110_v37  ;;  %vm152_vm1 = vcmp.ge.f32.partialorder %v110_v37, 0.0 }
 0x15f   :  { %v111_v40 = vmul.f32 0.70710677, %v107_v38  ;;  %v114_v41 = vmul.f32 0.3275911, %v112_v39  ;;  %v140_v46 = vsub.f32 0.0, %v112_v39  ;;  %v109_v21 = vmul.f32 0.5, %v107_v38 }
 0x161   :  { %v113_v42 = vand.u32 2147483647, %v111_v40  ;;  %v116_v43 = vadd.f32 1.0, %v114_v41  ;;  %v142_v48 = vmul.f32 %v140_v46, %v112_v39  ;;  %vm153_vm2 = vcmp.ge.f32.partialorder %v111_v40, 0.0 }
 0x163   :  { %v115_v44 = vmul.f32 0.3275911, %v113_v42  ;;  %419 = vrcp.f32 %v116_v43  ;;  %v141_v47 = vsub.f32 0.0, %v113_v42  ;;  %v144_v52 = vmul.f32 1.442695, %v142_v48 }
 0x165   :  { %v117_v45 = vadd.f32 1.0, %v115_v44  ;;  %v143_v51 = vmul.f32 %v141_v47, %v113_v42 }
 0x167   :  { %421 = vrcp.f32 %v117_v45  ;;  %v146_v56 = vmul.f32 1.442695, %v143_v51 }
 0x168   :  { %423 = vpow2.f32 %v144_v52 }
 0x169   :  { %425 = vpow2.f32 %v146_v56 }
 0x170   :  { %v420_v49 = vpop.eup %419 }
 0x171   :  { %v122_v50 = vmul.f32 1.0614054, %v420_v49 }
 0x173   :  { %v124_v53 = vadd.f32 -1.4531521, %v122_v50 }
 0x174   :  { %v422_v54 = vpop.eup %421 }
 0x175   :  { %v126_v55 = vmul.f32 %v420_v49, %v124_v53  ;;  %v123_v57 = vmul.f32 1.0614054, %v422_v54  ;;  %v424_v6 = vpop.eup %423 }
 0x176   :  { %v426_v11 = vpop.eup %425 }
 0x177   :  { %v128_v58 = vadd.f32 1.4214138, %v126_v55  ;;  %v125_v59 = vadd.f32 -1.4531521, %v123_v57 }
 0x179   :  { %v130_v60 = vmul.f32 %v420_v49, %v128_v58  ;;  %v127_v61 = vmul.f32 %v422_v54, %v125_v59 }
 0x17b   :  { %v132_v62 = vadd.f32 -0.28449672, %v130_v60  ;;  %v129_v63 = vadd.f32 1.4214138, %v127_v61 }
 0x17d   :  { %v134_v0 = vmul.f32 %v420_v49, %v132_v62  ;;  %v131_v1 = vmul.f32 %v422_v54, %v129_v63 }
 0x17f   :  { %v136_v2 = vadd.f32 0.2548296, %v134_v0  ;;  %v133_v3 = vadd.f32 -0.28449672, %v131_v1 }
 0x181   :  { %v138_v4 = vmul.f32 %v420_v49, %v136_v2  ;;  %v135_v5 = vmul.f32 %v422_v54, %v133_v3 }
 0x183   :  { %v148_v7 = vmul.f32 %v424_v6, %v138_v4  ;;  %v137_v8 = vadd.f32 0.2548296, %v135_v5 }
 0x185   :  { %v150_v9 = vsub.f32 1.0, %v148_v7  ;;  %v139_v10 = vmul.f32 %v422_v54, %v137_v8 }
 0x187   :  { %v154_v12 = vsub.f32 0.0, %v150_v9  ;;  %v149_v13 = vmul.f32 %v426_v11, %v139_v10 }
 0x189   :  { %v156_v14 = vsel %vm152_vm1, %v150_v9, %v154_v12  ;;  %v151_v15 = vsub.f32 1.0, %v149_v13 }
 0x18a   :  { %v158_v17 = vadd.f32 1.0, %v156_v14 }
 0x18b   :  { %v155_v18 = vsub.f32 0.0, %v151_v15 }
 0x18c   :  { %v160_v19 = vmul.f32 %v158_v17, %v108_v16 }
 0x18d   :  { %v157_v20 = vsel %vm153_vm2, %v151_v15, %v155_v18 }
 0x18e   :  { %395 = vmatprep.mubr.msk.f32.mxu0 %vm62_vm0, %v160_v19  ;;  %406 = vmatprep.mubr.msk.f32.mxu1 %vm62_vm0, %v160_v19  ;;  %v159_v22 = vadd.f32 1.0, %v157_v20 }
 0x190   :  { %v161_v23 = vmul.f32 %v159_v22, %v109_v21 }
 0x192   :  { %396 = vmatmul.mubr.msk.f32.vlgmr.msra.gmra.mxu0 %vm62_vm0, %v161_v23  ;;  %407 = vmatmul.mubr.msk.f32.vlgmr.msra.gmra.mxu1 %vm62_vm0, %v161_v23 }
 0x252   :  { %v397_v26 = vpop.f32.mrf.mxu0  ;;  %v408_v27 = vpop.f32.mrf.mxu1 }
 0x253   :  { %v251_v28 = vadd.f32 %v397_v26, %v368_v24  ;;  %v342_v29 = vadd.f32 %v408_v27, %v372_v25 }
 0x254   :  { %v245_v30 = vpop.f32.mrf.mxu0  ;;  %v336_v31 = vpop.f32.mrf.mxu1 }
 0x255   :  { %256 = vst.msk [vmem:[#allocation8 + $0x8] sm:$0xff] %vm254_vm3, %v251_v28  ;;  %347 = vst.msk [vmem:[#allocation8 + $0x18] sm:$0xff] %vm254_vm3, %v342_v29  ;;  %v246_v32 = vadd.f32 %v368_v24, %v245_v30  ;;  %v337_v33 = vadd.f32 %v372_v25, %v336_v31 }
 0x257   :  { %255 = vst.msk [vmem:[#allocation8] sm:$0xff] %vm254_vm3, %v246_v32  ;;  %346 = vst.msk [vmem:[#allocation8 + $0x10] sm:$0xff] %vm254_vm3, %v337_v33 }
 0x258   :  { %498 = shalt.err (!%p495_p5)
}
 0x259   :  { %359 = dma.vmem_to_hbm [thread:$0]  %s354_s14, 512, %s592_s5, [#allocation4], %s515_s27, %s515_s27, %s516_s28  }
 0x25a   :  { %511 = dma.done.wait [#allocation4], 512  }
 0x25b   :  { %512 = vsyncadd [#allocation4], 4294966784 }
 0x25c   :  { %363 = vsyncpa [#allocation3], 1 }
 0x25d   :  { %364 = vsyncpa [#allocation6], 1 }
 0x25e   :  { %365 = vsyncpa [#allocation4], 1 }

</bundles_post_ra>
